<compile_context>
chip_gen: v6e
topology: v6e:2x2x1
jax: 0.10.0
libtpu: 0.0.40
codegen_flags: <defaults>
</compile_context>

<pallas_src>
import functools

import jax
import jax.numpy as jnp
from jax import lax
from jax.experimental import pallas as pl
from jax.experimental.pallas import tpu as pltpu

_MIB = 1024 * 1024


def _round_up(x, m):
    return ((x + m - 1) // m) * m


# ----------------------------------------------------------------------------- kernel


def visual_encoder_kernel(pooled_ref, wp_ref, w1_ref, w2_ref, gamma_ref, beta_ref,
                          out_ref, *, d_out, row_splits, ln_eps=1e-5, l2_eps=1e-12):
    # pooled_ref : (TILE_N, PD_pad)        compute dtype (bf16 or f32), streams over batch
    # wp_ref     : (PD_pad, D_IN_pad)      compute dtype (resident, single-buffered)
    # w1_ref     : (D_IN_pad, D_OUT_pad)   compute dtype (resident)
    # w2_ref     : (D_OUT_pad, D_OUT_pad)  compute dtype (resident)
    # gamma/beta : (1, D_OUT_pad)          f32, zero in padded columns
    # out_ref    : (TILE_N, D_OUT_pad)     out dtype, padded columns come out zero
    cdtype = pooled_ref.dtype
    d_out_pad = out_ref.shape[-1]
    tn = pooled_ref.shape[0]
    rows_per = tn // row_splits

    # Load resident operands once per grid step (hoisted out of the row-split loop).
    wp = wp_ref[...]
    w1 = w1_ref[...]
    w2 = w2_ref[...]
    gamma = gamma_ref[...]
    beta = beta_ref[...]

    inv_d = jnp.float32(1.0 / d_out)
    col_mask = lax.broadcasted_iota(jnp.int32, (1, d_out_pad), 1) < d_out

    # Static row split: independent half-tiles let the scheduler overlap one half's MXU
    # matmuls with the other half's VPU/EUP epilogue (sigmoid / rsqrt / reductions).
    for h in range(row_splits):
        rows = pl.ds(h * rows_per, rows_per)
        x = pooled_ref[rows, :]

        # --- backbone: patch-embed matmul on the already patch-mean-pooled pixels ---
        feats = jnp.dot(x, wp, preferred_element_type=jnp.float32)          # (rows, D_IN_pad)

        # --- Projection: bias-free linears, gelu(x) = x * sigmoid(1.702 x),
        #     dropout in eval mode (identity) ---
        embed1 = jnp.dot(feats.astype(cdtype), w1,
                         preferred_element_type=jnp.float32)                # (rows, D_OUT_pad)
        g = embed1 * jax.nn.sigmoid(1.702 * embed1)                         # f32 on VPU/EUP
        embed2 = jnp.dot(g.astype(cdtype), w2, preferred_element_type=jnp.float32)
        s = embed1 + embed2                                                 # padded cols == 0

        # --- LayerNorm over the true d_out columns (padded cols contribute nothing) ---
        mu = jnp.sum(s, axis=-1, keepdims=True) * inv_d
        d = s - mu
        if d_out != d_out_pad:
            d = jnp.where(col_mask, d, 0.0)
        var = jnp.sum(d * d, axis=-1, keepdims=True) * inv_d
        ln = d * lax.rsqrt(var + ln_eps) * gamma + beta

        # --- final L2 normalization via a single rsqrt (eps floor avoids 0/0) ---
        inv_norm = lax.rsqrt(jnp.sum(ln * ln, axis=-1, keepdims=True) + l2_eps)
        out_ref[rows, :] = (ln * inv_norm).astype(out_ref.dtype)


# ----------------------------------------------------------------------------- host helpers


def prepare_visual_encoder_weights(w_patch_conv, w1_t, w2_t, gamma, beta, *, patch,
                                   compute_dtype=jnp.bfloat16):
    """Pad/cast all weights ONCE (hoisted out of the per-call path).

    w_patch_conv: (D_IN, C, p, p) conv2d weight (stride=p, kernel=p, no bias)
    w1_t: (D_IN, D_OUT) (= linear1.weight.T),  w2_t: (D_OUT, D_OUT) (= linear2.weight.T)
    gamma, beta: (D_OUT,) LayerNorm affine.
    """
    d_in, c, p, _ = w_patch_conv.shape
    d_out = w1_t.shape[1]
    pd = c * p * p

    pd_p = _round_up(pd, 128)
    d_in_p = _round_up(d_in, 128)
    d_out_p = _round_up(d_out, 128)

    def pad2(a, rows, cols):
        return jnp.pad(a, ((0, rows - a.shape[0]), (0, cols - a.shape[1])))

    # conv weight (D_IN, C, p, p) -> matmul weight (PD, D_IN); flatten order matches the
    # (c, pi, pj) order of the pooled-pixel vector produced in visual_encoder().
    wp = w_patch_conv.reshape(d_in, pd).T

    return dict(
        wp=pad2(wp, pd_p, d_in_p).astype(compute_dtype),
        w1=pad2(w1_t, d_in_p, d_out_p).astype(compute_dtype),
        w2=pad2(w2_t, d_out_p, d_out_p).astype(compute_dtype),
        gamma=pad2(gamma.reshape(1, d_out).astype(jnp.float32), 1, d_out_p),
        beta=pad2(beta.reshape(1, d_out).astype(jnp.float32), 1, d_out_p),
        patch=patch, channels=c, pd=pd, d_in=d_in, d_out=d_out,
        pd_p=pd_p, d_in_p=d_in_p, d_out_p=d_out_p,
        compute_dtype=compute_dtype,
    )


def _physical_vmem_bytes():
    try:
        return int(pltpu.get_tpu_info().vmem_capacity_bytes)
    except Exception:
        return 64 * _MIB  # conservative: v7x has 64 MiB per TensorCore


def _vmem_budget_bytes(tn, pd_p, d_in_p, d_out_p, cbytes, obytes, weight_buffers):
    weights = weight_buffers * (pd_p * d_in_p + d_in_p * d_out_p + d_out_p * d_out_p) * cbytes
    params = weight_buffers * 2 * d_out_p * 4                       # gamma/beta (f32)
    in_stream = 2 * tn * pd_p * cbytes                              # double-buffered input
    out_stream = 2 * tn * d_out_p * obytes                          # double-buffered output
    interm = 6 * tn * max(d_in_p, d_out_p) * 4                      # feats/e1/g/e2/s/ln in f32
    return weights + params + in_stream + out_stream + interm


def _choose_tile_n(n, tile_n, pd_p, d_in_p, d_out_p, cbytes, obytes, vmem_cap):
    # Multiples of 8 (sublane); bf16 inputs pack two rows per sublane which is merely
    # half-filled for tiny batches — correct, just not peak-dense.
    tn = min(_round_up(max(n, 1), 8), _round_up(tile_n, 8))

    # Guarantee >= 2 grid tiles when the batch allows it so v7x's second TensorCore gets
    # work (dimension_semantics=("parallel",) only helps with >= 2 grid steps).
    if n > 8:
        while _round_up(n, tn) // tn < 2 and tn > 8:
            tn = max(8, _round_up((tn + 1) // 2, 8))

    # Shrink further if the shape-derived VMEM budget (intermediates included) would not fit.
    while tn > 8 and _vmem_budget_bytes(tn, pd_p, d_in_p, d_out_p, cbytes, obytes,
                                        weight_buffers=1) > vmem_cap - 4 * _MIB:
        tn = max(8, _round_up(tn // 2, 8))
    return tn


# ----------------------------------------------------------------------------- wrapper


def visual_encoder(x_nchw, params, *, tile_n=256, out_dtype=jnp.float32):
    """x_nchw: (N, C, H, W) f32 (PyTorch NCHW). params: prepare_visual_encoder_weights(...)."""
    n, c, h, w = x_nchw.shape
    patch = params["patch"]
    ph, pw = h // patch, w // patch
    pd, d_out = params["pd"], params["d_out"]
    pd_p, d_in_p, d_out_p = params["pd_p"], params["d_in_p"], params["d_out_p"]
    cdtype = params["compute_dtype"]
    cbytes = jnp.dtype(cdtype).itemsize
    obytes = jnp.dtype(out_dtype).itemsize

    # Pool over patches BEFORE the patch-embed matmul (mean commutes with the linear,
    # bias-free conv): (N, C*p*p) instead of (N, P, C*p*p). Flatten order (c, pi, pj)
    # matches the conv-weight reshape in prepare_visual_encoder_weights().
    pooled = x_nchw.reshape(n, c, ph, patch, pw, patch).mean(axis=(2, 4)).reshape(n, pd)

    vmem_cap = _physical_vmem_bytes()
    tn = _choose_tile_n(n, tile_n, pd_p, d_in_p, d_out_p, cbytes, obytes, vmem_cap)
    n_p = _round_up(n, tn)
    row_splits = 2 if (tn >= 16 and tn % 16 == 0) else 1

    pooled_p = jnp.pad(pooled, ((0, n_p - n), (0, pd_p - pd))).astype(cdtype)

    kernel = functools.partial(visual_encoder_kernel, d_out=d_out, row_splits=row_splits)

    budget = _vmem_budget_bytes(tn, pd_p, d_in_p, d_out_p, cbytes, obytes, weight_buffers=1)
    vmem_limit = int(min(max(budget * 5 // 4, 16 * _MIB), max(vmem_cap - 4 * _MIB, 16 * _MIB)))

    def build_call(single_buffer_weights):
        # Constant-index weights/params never change across grid steps: single-buffer them
        # (pl.Buffered(1)) so resident VMEM is not doubled by the default 2-deep pipeline.
        w_kw = {"pipeline_mode": pl.Buffered(1)} if single_buffer_weights else {}
        grid_spec = pltpu.PrefetchScalarGridSpec(
            num_scalar_prefetch=0,
            grid=(n_p // tn,),
            in_specs=[
                pl.BlockSpec((tn, pd_p), lambda i: (i, 0)),             # streams over batch
                pl.BlockSpec((pd_p, d_in_p), lambda i: (0, 0), **w_kw),  # resident weights
                pl.BlockSpec((d_in_p, d_out_p), lambda i: (0, 0), **w_kw),
                pl.BlockSpec((d_out_p, d_out_p), lambda i: (0, 0), **w_kw),
                pl.BlockSpec((1, d_out_p), lambda i: (0, 0), **w_kw),
                pl.BlockSpec((1, d_out_p), lambda i: (0, 0), **w_kw),
            ],
            out_specs=pl.BlockSpec((tn, d_out_p), lambda i: (i, 0)),
        )
        return pl.pallas_call(
            kernel,
            out_shape=jax.ShapeDtypeStruct((n_p, d_out_p), out_dtype),
            grid_spec=grid_spec,
            compiler_params=pltpu.CompilerParams(
                dimension_semantics=("parallel",),      # batch tiles shard across TCs
                vmem_limit_bytes=vmem_limit,            # shape-derived, capped by physical VMEM
            ),
        )

    args = (pooled_p, params["wp"], params["w1"], params["w2"], params["gamma"], params["beta"])
    try:
        out_p = build_call(True)(*args)
    except Exception:
        # Fallback for Pallas versions that reject single-buffered (Buffered(1)) specs.
        out_p = build_call(False)(*args)

    return out_p[:n, :d_out]


# ----------------------------------------------------------------------------- reference


def visual_encoder_ref(x_nchw, w_patch_conv, w1_t, w2_t, gamma, beta, *, patch):
    """Pure-JAX f32 reference in the original conv-then-pool order."""
    n, c, h, w = x_nchw.shape
    ph, pw = h // patch, w // patch
    pd = c * patch * patch
    d_in = w_patch_conv.shape[0]
    patches = x_nchw.reshape(n, c, ph, patch, pw, patch)
    patches = jnp.transpose(patches, (0, 2, 4, 1, 3, 5)).reshape(n, ph * pw, pd)
    emb = patches @ w_patch_conv.reshape(d_in, pd).T           # (N, P, D_IN)
    feats = emb.mean(axis=1)                                   # (N, D_IN)
    e1 = feats @ w1_t
    g = e1 * jax.nn.sigmoid(1.702 * e1)
    e2 = g @ w2_t                                              # dropout eval = identity
    s = e1 + e2
    mu = s.mean(-1, keepdims=True)
    var = ((s - mu) ** 2).mean(-1, keepdims=True)
    ln = (s - mu) * lax.rsqrt(var + 1e-5) * gamma + beta
    return ln / jnp.linalg.norm(ln, axis=-1, keepdims=True)


if __name__ == "__main__":
    # small shapes: batch=2, channels=4, spatial=16, patch=8, d_in=32, d_out=32
    N, C, H, W = 2, 4, 16, 16
    PATCH = 8
    D_IN, D_OUT = 32, 32

    key = jax.random.PRNGKey(0)
    kx, kp, k1, k2 = jax.random.split(key, 4)

    x = jax.random.normal(kx, (N, C, H, W), dtype=jnp.float32)
    w_patch_conv = 0.02 * jax.random.normal(kp, (D_IN, C, PATCH, PATCH), dtype=jnp.float32)
    w1 = 0.05 * jax.random.normal(k1, (D_OUT, D_IN), dtype=jnp.float32)   # linear1.weight
    w2 = 0.05 * jax.random.normal(k2, (D_OUT, D_OUT), dtype=jnp.float32)  # linear2.weight
    gamma = jnp.ones((D_OUT,), dtype=jnp.float32)                          # layer_norm.weight
    beta = jnp.zeros((D_OUT,), dtype=jnp.float32)                          # layer_norm.bias

    ref = visual_encoder_ref(x, w_patch_conv, w1.T, w2.T, gamma, beta, patch=PATCH)

    # Weight pad/cast is done ONCE (hoisted out of the per-call path).
    params_bf16 = prepare_visual_encoder_weights(
        w_patch_conv, w1.T, w2.T, gamma, beta, patch=PATCH, compute_dtype=jnp.bfloat16)
    params_f32 = prepare_visual_encoder_weights(
        w_patch_conv, w1.T, w2.T, gamma, beta, patch=PATCH, compute_dtype=jnp.float32)

    # default perf path: bf16 matmul operands, f32 accumulation / normalization
    out_bf16 = jax.block_until_ready(visual_encoder(x, params_bf16))
    # exact f32 path for a tight correctness check
    out_f32 = jax.block_until_ready(visual_encoder(x, params_f32))

    for out in (out_bf16, out_f32):
        assert out.shape == (N, D_OUT)
        assert bool(jnp.all(jnp.isfinite(out)))
        norms = jnp.linalg.norm(out, axis=-1)
        assert bool(jnp.all(jnp.abs(norms - 1.0) < 1e-4))

    # f32 kernel vs pure-JAX reference
    assert bool(jnp.allclose(out_f32, ref, atol=1e-2, rtol=1e-2))
    # bf16 kernel: unit vectors should stay tightly aligned with the reference
    cos = jnp.sum(out_bf16 * ref, axis=-1)
    assert bool(jnp.all(cos > 0.99))

    print("KERNEL_OK")
</pallas_src>

<mosaic_0001>
module attributes {stable_mosaic.version = 11 : i64} {
  func.func @visual_encoder_kernel(%arg0: i32, %arg1: memref<8x256xbf16, #tpu.memory_space<vmem>>, %arg2: memref<256x128xbf16, #tpu.memory_space<vmem>>, %arg3: memref<128x128xbf16, #tpu.memory_space<vmem>>, %arg4: memref<128x128xbf16, #tpu.memory_space<vmem>>, %arg5: memref<1x128xf32, #tpu.memory_space<vmem>>, %arg6: memref<1x128xf32, #tpu.memory_space<vmem>>, %arg7: memref<8x128xf32, #tpu.memory_space<vmem>>) attributes {dimension_semantics = [#tpu.dimension_semantics<parallel>], iteration_bounds = array<i64: 1>, scalar_prefetch = 0 : i64, scratch_operands = 0 : i64, tpu.core_type = #tpu.core_type<tc>, window_params = [{transform_indices = @transform_0, window_bounds = array<i64: 8, 256>}, {pipeline_mode = #tpu.pipeline_mode<synchronous>, transform_indices = @transform_1, window_bounds = array<i64: 256, 128>}, {pipeline_mode = #tpu.pipeline_mode<synchronous>, transform_indices = @transform_2, window_bounds = array<i64: 128, 128>}, {pipeline_mode = #tpu.pipeline_mode<synchronous>, transform_indices = @transform_3, window_bounds = array<i64: 128, 128>}, {pipeline_mode = #tpu.pipeline_mode<synchronous>, transform_indices = @transform_4, window_bounds = array<i64: 1, 128>}, {pipeline_mode = #tpu.pipeline_mode<synchronous>, transform_indices = @transform_5, window_bounds = array<i64: 1, 128>}, {transform_indices = @transform_6, window_bounds = array<i64: 8, 128>}]} {
    %c0 = arith.constant 0 : index
    %c0_0 = arith.constant 0 : index
    %0 = vector.load %arg2[%c0, %c0_0] : memref<256x128xbf16, #tpu.memory_space<vmem>>, vector<256x128xbf16>
    %c0_1 = arith.constant 0 : index
    %c0_2 = arith.constant 0 : index
    %1 = vector.load %arg3[%c0_1, %c0_2] : memref<128x128xbf16, #tpu.memory_space<vmem>>, vector<128x128xbf16>
    %c0_3 = arith.constant 0 : index
    %c0_4 = arith.constant 0 : index
    %2 = vector.load %arg4[%c0_3, %c0_4] : memref<128x128xbf16, #tpu.memory_space<vmem>>, vector<128x128xbf16>
    %c0_5 = arith.constant 0 : index
    %c0_6 = arith.constant 0 : index
    %3 = vector.load %arg5[%c0_5, %c0_6] : memref<1x128xf32, #tpu.memory_space<vmem>>, vector<1x128xf32>
    %c0_7 = arith.constant 0 : index
    %c0_8 = arith.constant 0 : index
    %4 = vector.load %arg6[%c0_7, %c0_8] : memref<1x128xf32, #tpu.memory_space<vmem>>, vector<1x128xf32>
    %5 = tpu.iota {dimensions = array<i32: 1>} : vector<1x128xi32>
    %c32_i32 = arith.constant 32 : i32
    %6 = vector.broadcast %c32_i32 : i32 to vector<1x128xi32>
    %7 = arith.cmpi slt, %5, %6 : vector<1x128xi32>
    %c0_9 = arith.constant 0 : index
    %c0_10 = arith.constant 0 : index
    %8 = vector.load %arg1[%c0_9, %c0_10] : memref<8x256xbf16, #tpu.memory_space<vmem>>, vector<8x256xbf16>
    %cst = arith.constant dense<0.000000e+00> : vector<8x128xf32>
    %9 = tpu.matmul %8, %0, %cst {dimension_numbers = #tpu.dot_dimension_numbers<[1], [0], [0], [1], [0, 0, 1, 1], [], []>} : vector<8x256xbf16>, vector<256x128xbf16>, vector<8x128xf32> -> vector<8x128xf32>
    %10 = arith.truncf %9 : vector<8x128xf32> to vector<8x128xbf16>
    %cst_11 = arith.constant dense<0.000000e+00> : vector<8x128xf32>
    %11 = tpu.matmul %10, %1, %cst_11 {dimension_numbers = #tpu.dot_dimension_numbers<[1], [0], [0], [1], [0, 0, 1, 1], [], []>} : vector<8x128xbf16>, vector<128x128xbf16>, vector<8x128xf32> -> vector<8x128xf32>
    %cst_12 = arith.constant 1.702000e+00 : f32
    %12 = vector.broadcast %cst_12 : f32 to vector<8x128xf32>
    %13 = arith.mulf %12, %11 : vector<8x128xf32>
    %14 = arith.negf %13 : vector<8x128xf32>
    %15 = math.exp %14 : vector<8x128xf32>
    %cst_13 = arith.constant 1.000000e+00 : f32
    %16 = vector.broadcast %cst_13 : f32 to vector<8x128xf32>
    %17 = arith.addf %16, %15 : vector<8x128xf32>
    %18 = arith.divf %16, %17 : vector<8x128xf32>
    %19 = arith.mulf %11, %18 : vector<8x128xf32>
    %20 = arith.truncf %19 : vector<8x128xf32> to vector<8x128xbf16>
    %cst_14 = arith.constant dense<0.000000e+00> : vector<8x128xf32>
    %21 = tpu.matmul %20, %2, %cst_14 {dimension_numbers = #tpu.dot_dimension_numbers<[1], [0], [0], [1], [0, 0, 1, 1], [], []>} : vector<8x128xbf16>, vector<128x128xbf16>, vector<8x128xf32> -> vector<8x128xf32>
    %22 = arith.addf %11, %21 : vector<8x128xf32>
    %cst_15 = arith.constant dense<0.000000e+00> : vector<8xf32>
    %23 = vector.multi_reduction <add>, %22, %cst_15 [1] : vector<8x128xf32> to vector<8xf32>
    %24 = vector.shape_cast %23 : vector<8xf32> to vector<8x1xf32>
    %cst_16 = arith.constant 3.125000e-02 : f32
    %25 = vector.broadcast %cst_16 : f32 to vector<8x1xf32>
    %26 = arith.mulf %24, %25 : vector<8x1xf32>
    %27 = vector.broadcast %26 : vector<8x1xf32> to vector<8x128xf32>
    %28 = arith.subf %22, %27 : vector<8x128xf32>
    %cst_17 = arith.constant 0.000000e+00 : f32
    %29 = vector.shape_cast %7 : vector<1x128xi1> to vector<1x128xi1>
    %30 = vector.broadcast %29 : vector<1x128xi1> to vector<8x128xi1>
    %31 = vector.broadcast %cst_17 : f32 to vector<8x128xf32>
    %32 = arith.select %30, %28, %31 : vector<8x128xi1>, vector<8x128xf32>
    %33 = arith.mulf %32, %32 : vector<8x128xf32>
    %cst_18 = arith.constant dense<0.000000e+00> : vector<8xf32>
    %34 = vector.multi_reduction <add>, %33, %cst_18 [1] : vector<8x128xf32> to vector<8xf32>
    %35 = vector.shape_cast %34 : vector<8xf32> to vector<8x1xf32>
    %cst_19 = arith.constant 3.125000e-02 : f32
    %36 = vector.broadcast %cst_19 : f32 to vector<8x1xf32>
    %37 = arith.mulf %35, %36 : vector<8x1xf32>
    %cst_20 = arith.constant 9.99999974E-6 : f32
    %38 = vector.broadcast %cst_20 : f32 to vector<8x1xf32>
    %39 = arith.addf %37, %38 : vector<8x1xf32>
    %40 = math.rsqrt %39 : vector<8x1xf32>
    %41 = vector.broadcast %40 : vector<8x1xf32> to vector<8x128xf32>
    %42 = arith.mulf %32, %41 : vector<8x128xf32>
    %43 = vector.broadcast %3 : vector<1x128xf32> to vector<8x128xf32>
    %44 = arith.mulf %42, %43 : vector<8x128xf32>
    %45 = vector.broadcast %4 : vector<1x128xf32> to vector<8x128xf32>
    %46 = arith.addf %44, %45 : vector<8x128xf32>
    %47 = arith.mulf %46, %46 : vector<8x128xf32>
    %cst_21 = arith.constant dense<0.000000e+00> : vector<8xf32>
    %48 = vector.multi_reduction <add>, %47, %cst_21 [1] : vector<8x128xf32> to vector<8xf32>
    %49 = vector.shape_cast %48 : vector<8xf32> to vector<8x1xf32>
    %cst_22 = arith.constant 9.99999996E-13 : f32
    %50 = vector.broadcast %cst_22 : f32 to vector<8x1xf32>
    %51 = arith.addf %49, %50 : vector<8x1xf32>
    %52 = math.rsqrt %51 : vector<8x1xf32>
    %53 = vector.broadcast %52 : vector<8x1xf32> to vector<8x128xf32>
    %54 = arith.mulf %46, %53 : vector<8x128xf32>
    %c0_23 = arith.constant 0 : index
    %c0_24 = arith.constant 0 : index
    %55 = vector.load %arg7[%c0_23, %c0_24] : memref<8x128xf32, #tpu.memory_space<vmem>>, vector<8x128xf32>
    tpu.vector_store %arg7[%c0_23, %c0_24], %54 {strides = array<i32>} : memref<8x128xf32, #tpu.memory_space<vmem>>, vector<8x128xf32>,
    return
  }
  func.func @transform_0(%arg0: i32) -> (i32, i32) {
    %c0_i32 = arith.constant 0 : i32
    %c0_i32_0 = arith.constant 0 : i32
    return %arg0, %c0_i32 : i32, i32
  }
  func.func @transform_1(%arg0: i32) -> (i32, i32) {
    %c0_i32 = arith.constant 0 : i32
    %c0_i32_0 = arith.constant 0 : i32
    %c0_i32_1 = arith.constant 0 : i32
    return %c0_i32, %c0_i32_0 : i32, i32
  }
  func.func @transform_2(%arg0: i32) -> (i32, i32) {
    %c0_i32 = arith.constant 0 : i32
    %c0_i32_0 = arith.constant 0 : i32
    %c0_i32_1 = arith.constant 0 : i32
    return %c0_i32, %c0_i32_0 : i32, i32
  }
  func.func @transform_3(%arg0: i32) -> (i32, i32) {
    %c0_i32 = arith.constant 0 : i32
    %c0_i32_0 = arith.constant 0 : i32
    %c0_i32_1 = arith.constant 0 : i32
    return %c0_i32, %c0_i32_0 : i32, i32
  }
  func.func @transform_4(%arg0: i32) -> (i32, i32) {
    %c0_i32 = arith.constant 0 : i32
    %c0_i32_0 = arith.constant 0 : i32
    %c0_i32_1 = arith.constant 0 : i32
    return %c0_i32, %c0_i32_0 : i32, i32
  }
  func.func @transform_5(%arg0: i32) -> (i32, i32) {
    %c0_i32 = arith.constant 0 : i32
    %c0_i32_0 = arith.constant 0 : i32
    %c0_i32_1 = arith.constant 0 : i32
    return %c0_i32, %c0_i32_0 : i32, i32
  }
  func.func @transform_6(%arg0: i32) -> (i32, i32) {
    %c0_i32 = arith.constant 0 : i32
    %c0_i32_0 = arith.constant 0 : i32
    return %arg0, %c0_i32 : i32, i32
  }
}

module attributes {stable_mosaic.version = 11 : i64} {
  func.func @visual_encoder_kernel(%arg0: i32, %arg1: memref<8x256xbf16, #tpu.memory_space<vmem>>, %arg2: memref<256x128xbf16, #tpu.memory_space<vmem>>, %arg3: memref<128x128xbf16, #tpu.memory_space<vmem>>, %arg4: memref<128x128xbf16, #tpu.memory_space<vmem>>, %arg5: memref<1x128xf32, #tpu.memory_space<vmem>>, %arg6: memref<1x128xf32, #tpu.memory_space<vmem>>, %arg7: memref<8x128xf32, #tpu.memory_space<vmem>>) attributes {dimension_semantics = [#tpu.dimension_semantics<parallel>], iteration_bounds = array<i64: 1>, scalar_prefetch = 0 : i64, scratch_operands = 0 : i64, tpu.core_type = #tpu.core_type<tc>, window_params = [{transform_indices = @transform_0, window_bounds = array<i64: 8, 256>}, {pipeline_mode = #tpu.pipeline_mode<synchronous>, transform_indices = @transform_1, window_bounds = array<i64: 256, 128>}, {pipeline_mode = #tpu.pipeline_mode<synchronous>, transform_indices = @transform_2, window_bounds = array<i64: 128, 128>}, {pipeline_mode = #tpu.pipeline_mode<synchronous>, transform_indices = @transform_3, window_bounds = array<i64: 128, 128>}, {pipeline_mode = #tpu.pipeline_mode<synchronous>, transform_indices = @transform_4, window_bounds = array<i64: 1, 128>}, {pipeline_mode = #tpu.pipeline_mode<synchronous>, transform_indices = @transform_5, window_bounds = array<i64: 1, 128>}, {transform_indices = @transform_6, window_bounds = array<i64: 8, 128>}]} {
    %c0 = arith.constant 0 : index
    %c0_0 = arith.constant 0 : index
    %0 = vector.load %arg2[%c0, %c0_0] : memref<256x128xbf16, #tpu.memory_space<vmem>>, vector<256x128xbf16>
    %c0_1 = arith.constant 0 : index
    %c0_2 = arith.constant 0 : index
    %1 = vector.load %arg3[%c0_1, %c0_2] : memref<128x128xbf16, #tpu.memory_space<vmem>>, vector<128x128xbf16>
    %c0_3 = arith.constant 0 : index
    %c0_4 = arith.constant 0 : index
    %2 = vector.load %arg4[%c0_3, %c0_4] : memref<128x128xbf16, #tpu.memory_space<vmem>>, vector<128x128xbf16>
    %c0_5 = arith.constant 0 : index
    %c0_6 = arith.constant 0 : index
    %3 = vector.load %arg5[%c0_5, %c0_6] : memref<1x128xf32, #tpu.memory_space<vmem>>, vector<1x128xf32>
    %c0_7 = arith.constant 0 : index
    %c0_8 = arith.constant 0 : index
    %4 = vector.load %arg6[%c0_7, %c0_8] : memref<1x128xf32, #tpu.memory_space<vmem>>, vector<1x128xf32>
    %5 = tpu.iota {dimensions = array<i32: 1>} : vector<1x128xi32>
    %c32_i32 = arith.constant 32 : i32
    %6 = vector.broadcast %c32_i32 : i32 to vector<1x128xi32>
    %7 = arith.cmpi slt, %5, %6 : vector<1x128xi32>
    %c0_9 = arith.constant 0 : index
    %c0_10 = arith.constant 0 : index
    %8 = vector.load %arg1[%c0_9, %c0_10] : memref<8x256xbf16, #tpu.memory_space<vmem>>, vector<8x256xbf16>
    %cst = arith.constant dense<0.000000e+00> : vector<8x128xf32>
    %9 = tpu.matmul %8, %0, %cst {dimension_numbers = #tpu.dot_dimension_numbers<[1], [0], [0], [1], [0, 0, 1, 1], [], []>} : vector<8x256xbf16>, vector<256x128xbf16>, vector<8x128xf32> -> vector<8x128xf32>
    %10 = arith.truncf %9 : vector<8x128xf32> to vector<8x128xbf16>
    %cst_11 = arith.constant dense<0.000000e+00> : vector<8x128xf32>
    %11 = tpu.matmul %10, %1, %cst_11 {dimension_numbers = #tpu.dot_dimension_numbers<[1], [0], [0], [1], [0, 0, 1, 1], [], []>} : vector<8x128xbf16>, vector<128x128xbf16>, vector<8x128xf32> -> vector<8x128xf32>
    %cst_12 = arith.constant 1.702000e+00 : f32
    %12 = vector.broadcast %cst_12 : f32 to vector<8x128xf32>
    %13 = arith.mulf %12, %11 : vector<8x128xf32>
    %14 = arith.negf %13 : vector<8x128xf32>
    %15 = math.exp %14 : vector<8x128xf32>
    %cst_13 = arith.constant 1.000000e+00 : f32
    %16 = vector.broadcast %cst_13 : f32 to vector<8x128xf32>
    %17 = arith.addf %16, %15 : vector<8x128xf32>
    %18 = arith.divf %16, %17 : vector<8x128xf32>
    %19 = arith.mulf %11, %18 : vector<8x128xf32>
    %20 = arith.truncf %19 : vector<8x128xf32> to vector<8x128xbf16>
    %cst_14 = arith.constant dense<0.000000e+00> : vector<8x128xf32>
    %21 = tpu.matmul %20, %2, %cst_14 {dimension_numbers = #tpu.dot_dimension_numbers<[1], [0], [0], [1], [0, 0, 1, 1], [], []>} : vector<8x128xbf16>, vector<128x128xbf16>, vector<8x128xf32> -> vector<8x128xf32>
    %22 = arith.addf %11, %21 : vector<8x128xf32>
    %cst_15 = arith.constant dense<0.000000e+00> : vector<8xf32>
    %23 = vector.multi_reduction <add>, %22, %cst_15 [1] : vector<8x128xf32> to vector<8xf32>
    %24 = vector.shape_cast %23 : vector<8xf32> to vector<8x1xf32>
    %cst_16 = arith.constant 3.125000e-02 : f32
    %25 = vector.broadcast %cst_16 : f32 to vector<8x1xf32>
    %26 = arith.mulf %24, %25 : vector<8x1xf32>
    %27 = vector.broadcast %26 : vector<8x1xf32> to vector<8x128xf32>
    %28 = arith.subf %22, %27 : vector<8x128xf32>
    %cst_17 = arith.constant 0.000000e+00 : f32
    %29 = vector.shape_cast %7 : vector<1x128xi1> to vector<1x128xi1>
    %30 = vector.broadcast %29 : vector<1x128xi1> to vector<8x128xi1>
    %31 = vector.broadcast %cst_17 : f32 to vector<8x128xf32>
    %32 = arith.select %30, %28, %31 : vector<8x128xi1>, vector<8x128xf32>
    %33 = arith.mulf %32, %32 : vector<8x128xf32>
    %cst_18 = arith.constant dense<0.000000e+00> : vector<8xf32>
    %34 = vector.multi_reduction <add>, %33, %cst_18 [1] : vector<8x128xf32> to vector<8xf32>
    %35 = vector.shape_cast %34 : vector<8xf32> to vector<8x1xf32>
    %cst_19 = arith.constant 3.125000e-02 : f32
    %36 = vector.broadcast %cst_19 : f32 to vector<8x1xf32>
    %37 = arith.mulf %35, %36 : vector<8x1xf32>
    %cst_20 = arith.constant 9.99999974E-6 : f32
    %38 = vector.broadcast %cst_20 : f32 to vector<8x1xf32>
    %39 = arith.addf %37, %38 : vector<8x1xf32>
    %40 = math.rsqrt %39 : vector<8x1xf32>
    %41 = vector.broadcast %40 : vector<8x1xf32> to vector<8x128xf32>
    %42 = arith.mulf %32, %41 : vector<8x128xf32>
    %43 = vector.broadcast %3 : vector<1x128xf32> to vector<8x128xf32>
    %44 = arith.mulf %42, %43 : vector<8x128xf32>
    %45 = vector.broadcast %4 : vector<1x128xf32> to vector<8x128xf32>
    %46 = arith.addf %44, %45 : vector<8x128xf32>
    %47 = arith.mulf %46, %46 : vector<8x128xf32>
    %cst_21 = arith.constant dense<0.000000e+00> : vector<8xf32>
    %48 = vector.multi_reduction <add>, %47, %cst_21 [1] : vector<8x128xf32> to vector<8xf32>
    %49 = vector.shape_cast %48 : vector<8xf32> to vector<8x1xf32>
    %cst_22 = arith.constant 9.99999996E-13 : f32
    %50 = vector.broadcast %cst_22 : f32 to vector<8x1xf32>
    %51 = arith.addf %49, %50 : vector<8x1xf32>
    %52 = math.rsqrt %51 : vector<8x1xf32>
    %53 = vector.broadcast %52 : vector<8x1xf32> to vector<8x128xf32>
    %54 = arith.mulf %46, %53 : vector<8x128xf32>
    %c0_23 = arith.constant 0 : index
    %c0_24 = arith.constant 0 : index
    %55 = vector.load %arg7[%c0_23, %c0_24] : memref<8x128xf32, #tpu.memory_space<vmem>>, vector<8x128xf32>
    tpu.vector_store %arg7[%c0_23, %c0_24], %54 {strides = array<i32>} : memref<8x128xf32, #tpu.memory_space<vmem>>, vector<8x128xf32>,
    return
  }
  func.func @transform_0(%arg0: i32) -> (i32, i32) {
    %c0_i32 = arith.constant 0 : i32
    %c0_i32_0 = arith.constant 0 : i32
    return %arg0, %c0_i32 : i32, i32
  }
  func.func @transform_1(%arg0: i32) -> (i32, i32) {
    %c0_i32 = arith.constant 0 : i32
    %c0_i32_0 = arith.constant 0 : i32
    %c0_i32_1 = arith.constant 0 : i32
    return %c0_i32, %c0_i32_0 : i32, i32
  }
  func.func @transform_2(%arg0: i32) -> (i32, i32) {
    %c0_i32 = arith.constant 0 : i32
    %c0_i32_0 = arith.constant 0 : i32
    %c0_i32_1 = arith.constant 0 : i32
    return %c0_i32, %c0_i32_0 : i32, i32
  }
  func.func @transform_3(%arg0: i32) -> (i32, i32) {
    %c0_i32 = arith.constant 0 : i32
    %c0_i32_0 = arith.constant 0 : i32
    %c0_i32_1 = arith.constant 0 : i32
    return %c0_i32, %c0_i32_0 : i32, i32
  }
  func.func @transform_4(%arg0: i32) -> (i32, i32) {
    %c0_i32 = arith.constant 0 : i32
    %c0_i32_0 = arith.constant 0 : i32
    %c0_i32_1 = arith.constant 0 : i32
    return %c0_i32, %c0_i32_0 : i32, i32
  }
  func.func @transform_5(%arg0: i32) -> (i32, i32) {
    %c0_i32 = arith.constant 0 : i32
    %c0_i32_0 = arith.constant 0 : i32
    %c0_i32_1 = arith.constant 0 : i32
    return %c0_i32, %c0_i32_0 : i32, i32
  }
  func.func @transform_6(%arg0: i32) -> (i32, i32) {
    %c0_i32 = arith.constant 0 : i32
    %c0_i32_0 = arith.constant 0 : i32
    return %arg0, %c0_i32 : i32, i32
  }
}

</mosaic_0001>

<bundles_post_ra>
// kernel: tpu_custom_call.1
= control target key start
LH: loop header
LB: loop body
LE: loop exit
PB: predicated region body
PF: predicated region fallthrough
CT: control target
= control target key end

     0   :  { %11 = vsyncpa [#allocation3], 0  ;;  %s898_s0 = inlined_call_operand.hbm [shape: bf16[8,256], index: 0, kind: input, shape index: {}]   ;;  %s899_s1 = inlined_call_operand.hbm [shape: bf16[256,128], index: 1, kind: input, shape index: {}]   ;;  %s900_s2 = inlined_call_operand.hbm [shape: bf16[128,128], index: 2, kind: input, shape index: {}]   ;;  %s901_s3 = inlined_call_operand.hbm [shape: bf16[128,128], index: 3, kind: input, shape index: {}]   ;;  %s902_s4 = inlined_call_operand.vmem [shape: f32[1,128], index: 4, kind: input, shape index: {}]   ;;  %s903_s5 = inlined_call_operand.vmem [shape: f32[1,128], index: 5, kind: input, shape index: {}]   ;;  %s904_s6 = inlined_call_operand.hbm [shape: f32[8,128], index: 6, kind: output, shape index: {}]  }
   0x1   :  { %12 = vsyncpa [#allocation6], 0 }
   0x2   :  { %13 = vsyncpa [#allocation9], 0 }
   0x3   :  { %14 = vsyncpa [#allocation4], 0  ;;  %s806_s21 = smov [#allocation5]  }
   0x4   :  { %s30_s22 = sshll.u32 %s806_s21, 4  ;;  %s31_s22 = int_to_ptr.vmem [resolvable:$true] %s30_s22 }
   0x5   :  { %s706_s23 = scalar_lea.vmem %s31_s22, 2048  ;;  %p711_p1 = scmp.lt.s32.totalorder %s31_s22, %s31_s22 }
   0x6   :  { %p707_p0 = scmp.ne.s32.totalorder %s31_s22, %s706_s23  ;;  %p712_p2 = scmp.lt.s32.totalorder %s706_s23, %s706_s23 }
   0x8   :  { %p713_p3 = por %p712_p2, %p711_p1 }
   0xa   :  { %p714_p4 = pnand %p713_p3, %p707_p0 }
   0xc   :  { %717 = shalt.err (!%p714_p4)
}
   0xd   :  { %s807_s24 = smov 64   ;;  %s808_s25 = smov 4  }
   0xe   :  { %36 = dma.hbm_to_vmem [thread:$0]  %s899_s1, 2048, %s31_s22, [#allocation6], %s807_s24, %s807_s24, %s808_s25  }
   0xf   :  { %s809_s28 = smov [#allocation2]   ;;  %s810_s30 = smov [#allocation7]  }
  0x10   :  { %s21_s29 = sshll.u32 %s809_s28, 4  ;;  %s42_s7 = sshll.u32 %s810_s30, 4  ;;  %s22_s29 = int_to_ptr.vmem [resolvable:$true] %s21_s29  ;;  %s43_s7 = int_to_ptr.vmem [resolvable:$true] %s42_s7 }
  0x11   :  { %s726_s8 = scalar_lea.vmem %s22_s29, 128  ;;  %p731_p6 = scmp.lt.s32.totalorder %s22_s29, %s22_s29 }
  0x12   :  { %p727_p5 = scmp.ne.s32.totalorder %s22_s29, %s726_s8  ;;  %p732_p7 = scmp.lt.s32.totalorder %s726_s8, %s726_s8 }
  0x14   :  { %p733_p8 = por %p732_p7, %p731_p6 }
  0x16   :  { %p734_p9 = pnand %p733_p8, %p727_p5 }
  0x18   :  { %737 = shalt.err (!%p734_p9)
}
  0x19   :  { %24 = dma.hbm_to_vmem [thread:$0]  %s898_s0, 128, %s22_s29, [#allocation3]  }
  0x1a   :  { %s746_s11 = scalar_lea.vmem %s43_s7, 1024  ;;  %p751_p11 = scmp.lt.s32.totalorder %s43_s7, %s43_s7 }
  0x1b   :  { %p747_p10 = scmp.ne.s32.totalorder %s43_s7, %s746_s11  ;;  %p752_p12 = scmp.lt.s32.totalorder %s746_s11, %s746_s11 }
  0x1d   :  { %p753_p13 = por %p752_p12, %p751_p11 }
  0x1f   :  { %p754_p0 = pnand %p753_p13, %p747_p10 }
  0x21   :  { %757 = shalt.err (!%p754_p0)
}
  0x22   :  { %48 = dma.hbm_to_vmem [thread:$0]  %s900_s2, 1024, %s43_s7, [#allocation6], %s807_s24, %s807_s24, %s808_s25  }
  0x23   :  { %s811_s13 = smov [#allocation8]  }
  0x24   :  { %s54_s14 = sshll.u32 %s811_s13, 4  ;;  %s55_s14 = int_to_ptr.vmem [resolvable:$true] %s54_s14 }
  0x25   :  { %s766_s15 = scalar_lea.vmem %s55_s14, 1024  ;;  %p771_p2 = scmp.lt.s32.totalorder %s55_s14, %s55_s14 }
  0x26   :  { %p767_p1 = scmp.ne.s32.totalorder %s55_s14, %s766_s15  ;;  %p772_p3 = scmp.lt.s32.totalorder %s766_s15, %s766_s15 }
  0x28   :  { %p773_p4 = por %p772_p3, %p771_p2 }
  0x2a   :  { %p774_p5 = pnand %p773_p4, %p767_p1 }
  0x2c   :  { %777 = shalt.err (!%p774_p5)
}
  0x2d   :  { %60 = dma.hbm_to_vmem [thread:$0]  %s901_s3, 1024, %s55_s14, [#allocation9], %s807_s24, %s807_s24, %s808_s25  }
  0x2e   :  { %798 = dma.done.wait [#allocation3], 128  }
  0x2f   :  { %799 = vsyncadd [#allocation3], 4294967168 }
  0x30   :  { %800 = dma.done.wait [#allocation6], 3072  }
  0x31   :  { %801 = vsyncadd [#allocation6], 4294964224 }
  0x32   :  { %802 = dma.done.wait [#allocation9], 1024  }
  0x33   :  { %803 = vsyncadd [#allocation9], 4294966272  ;;  %v812_v0 = vmov 0.0   ;;  %v656_v1 = vld [vmem:[#allocation5 + $0x78] sm:$0xff]   ;;  %v658_v3 = vld [vmem:[#allocation5 + $0x70] sm:$0xff]   ;;  %vm813_vm0 = vmmov 0   ;;  %v144_v58 = vlaneseq }
  0x34   :  { %607 = vmatprep.subr.bf16.mxu1 %v812_v0  ;;  %v657_v2 = vld [vmem:[#allocation5 + $0x38] sm:$0xff]   ;;  %567 = vmatprep.subr.bf16.mxu0 %v656_v1  ;;  %v659_v4 = vld [vmem:[#allocation5 + $0x30] sm:$0xff]   ;;  %v660_v5 = vld [vmem:[#allocation5 + $0x68] sm:$0xff]   ;;  %s814_s19 = smov [#allocation10]  }
  0x35   :  { %568 = vmatpush3.bf16.msra.mxu0 %v657_v2  ;;  %v661_v6 = vld [vmem:[#allocation5 + $0x28] sm:$0xff]   ;;  %v662_v7 = vld [vmem:[#allocation5 + $0x60] sm:$0xff]   ;;  %v664_v9 = vld [vmem:[#allocation5 + $0x58] sm:$0xff]   ;;  %623 = vmatprep.mubr.msk.bf16.mxu1 %vm813_vm0, %v812_v0  ;;  %v145_v59 = vand.u32 127, %v144_v58  ;;  %s519_s20 = sshll.u32 %s814_s19, 4  ;;  %s520_s20 = int_to_ptr.vmem [resolvable:$true] %s519_s20 }
  0x36   :  { %569 = vmatprep.subr.bf16.mxu0 %v658_v3  ;;  %v663_v8 = vld [vmem:[#allocation5 + $0x20] sm:$0xff]   ;;  %v665_v10 = vld [vmem:[#allocation5 + $0x18] sm:$0xff]   ;;  %v666_v11 = vld [vmem:[#allocation5 + $0x50] sm:$0xff]   ;;  %s778_s21 = scalar_lea.vmem %s520_s20, 128  ;;  %p783_p7 = scmp.lt.s32.totalorder %s520_s20, %s520_s20 }
  0x37   :  { %v147_v12 = vld [vmem:[#allocation2] sm:$0xff]  ;;  %v667_v15 = vld [vmem:[#allocation5 + $0x10] sm:$0xff]   ;;  %v668_v16 = vld [vmem:[#allocation5 + $0x48] sm:$0xff]   ;;  %vm146_vm1 = vcmp.lt.s32.totalorder %v145_v59, 32  ;;  %p779_p6 = scmp.ne.s32.totalorder %s520_s20, %s778_s21  ;;  %p784_p8 = scmp.lt.s32.totalorder %s778_s21, %s778_s21 }
  0x38   :  { %v531_v13 = vcombine.high %v147_v12, %v147_v12  ;;  %v674_v14 = vld [vmem:[#allocation7 + $0x38] sm:$0xff]   ;;  %v675_v17 = vld [vmem:[#allocation7 + $0x30] sm:$0xff]   ;;  %v669_v18 = vld [vmem:[#allocation5 + $0x8] sm:$0xff]   ;;  %v530_v23 = vcombine.low %v147_v12, %v147_v12 }
  0x39   :  { %570 = vmatpush3.bf16.msra.mxu0 %v659_v4  ;;  %608 = vmatpush3.bf16.msra.mxu1 %v674_v14  ;;  %v670_v19 = vld [vmem:[#allocation5 + $0x40] sm:$0xff]   ;;  %v676_v20 = vld [vmem:[#allocation7 + $0x28] sm:$0xff]   ;;  %v678_v24 = vld [vmem:[#allocation7 + $0x18] sm:$0xff]   ;;  %p785_p9 = por %p784_p8, %p783_p7 }
  0x3a   :  { %571 = vmatprep.subr.bf16.mxu0 %v660_v5  ;;  %283 = vmatprep.mubr.bf16.mxu0 %v531_v13  ;;  %v671_v21 = vld [vmem:[#allocation5] sm:$0xff]   ;;  %v679_v25 = vld [vmem:[#allocation7 + $0x10] sm:$0xff]   ;;  %v680_v26 = vld [vmem:[#allocation7 + $0x8] sm:$0xff]  }
  0x3b   :  { %609 = vmatprep.subr.bf16.mxu1 %v812_v0  ;;  %v677_v22 = vld [vmem:[#allocation7 + $0x20] sm:$0xff]   ;;  %v682_v34 = vld [vmem:[#allocation8 + $0x38] sm:$0xff]   ;;  %v683_v35 = vld [vmem:[#allocation8 + $0x30] sm:$0xff]   ;;  %p786_p10 = pnand %p785_p9, %p779_p6 }
  0x3c   :  { %v681_v27 = vld [vmem:[#allocation7] sm:$0xff]   ;;  %v684_v36 = vld [vmem:[#allocation8 + $0x28] sm:$0xff]   ;;  %v686_v38 = vld [vmem:[#allocation8 + $0x18] sm:$0xff]  }
  0x3d   :  { %572 = vmatpush3.bf16.msra.mxu0 %v661_v6  ;;  %610 = vmatpush3.bf16.msra.mxu1 %v675_v17  ;;  %v685_v37 = vld [vmem:[#allocation8 + $0x20] sm:$0xff]   ;;  %v687_v39 = vld [vmem:[#allocation8 + $0x10] sm:$0xff]   ;;  %v688_v40 = vld [vmem:[#allocation8 + $0x8] sm:$0xff]  }
  0x3e   :  { %573 = vmatprep.subr.bf16.mxu0 %v662_v7  ;;  %611 = vmatprep.subr.bf16.mxu1 %v812_v0  ;;  %v689_v41 = vld [vmem:[#allocation8] sm:$0xff]   ;;  %v565_v5 = vld [vmem:[%s902_s4] ss:$0 sm:$0xff] }
  0x3f   :  { %v566_v7 = vld [vmem:[%s903_s5] ss:$0 sm:$0xff] }
  0x41   :  { %574 = vmatpush3.bf16.msra.mxu0 %v663_v8  ;;  %612 = vmatpush3.bf16.msra.mxu1 %v676_v20 }
  0x42   :  { %575 = vmatprep.subr.bf16.mxu0 %v664_v9  ;;  %613 = vmatprep.subr.bf16.mxu1 %v812_v0 }
  0x45   :  { %576 = vmatpush3.bf16.msra.mxu0 %v665_v10  ;;  %614 = vmatpush3.bf16.msra.mxu1 %v677_v22 }
  0x46   :  { %577 = vmatprep.subr.bf16.mxu0 %v666_v11  ;;  %615 = vmatprep.subr.bf16.mxu1 %v812_v0 }
  0x49   :  { %578 = vmatpush3.bf16.msra.mxu0 %v667_v15  ;;  %616 = vmatpush3.bf16.msra.mxu1 %v678_v24 }
  0x4a   :  { %579 = vmatprep.subr.bf16.mxu0 %v668_v16  ;;  %617 = vmatprep.subr.bf16.mxu1 %v812_v0 }
  0x4d   :  { %580 = vmatpush3.bf16.msra.mxu0 %v669_v18  ;;  %618 = vmatpush3.bf16.msra.mxu1 %v679_v25 }
  0x4e   :  { %581 = vmatprep.subr.bf16.mxu0 %v670_v19  ;;  %619 = vmatprep.subr.bf16.mxu1 %v812_v0 }
  0x51   :  { %582 = vmatpush3.bf16.msra.mxu0 %v671_v21  ;;  %620 = vmatpush3.bf16.msra.mxu1 %v680_v26 }
  0x52   :  { %627 = vmatprep.subr.bf16.mxu0 %v812_v0  ;;  %621 = vmatprep.subr.bf16.mxu1 %v812_v0 }
  0x54   :  { %284 = vmatmul.mubr.bf16.vlgmr.msra.gmra.mxu0 %v530_v23 }
  0x55   :  { %622 = vmatpush3.bf16.msra.mxu1 %v681_v27  ;;  %643 = vmatprep.mubr.msk.bf16.mxu0 %vm813_vm0, %v812_v0 }
  0x56   :  { %628 = vmatpush3.bf16.msra.mxu0 %v682_v34 }
  0x57   :  { %629 = vmatprep.subr.bf16.mxu0 %v812_v0 }
  0x5a   :  { %630 = vmatpush3.bf16.msra.mxu0 %v683_v35 }
  0x5b   :  { %631 = vmatprep.subr.bf16.mxu0 %v812_v0 }
  0x5e   :  { %632 = vmatpush3.bf16.msra.mxu0 %v684_v36 }
  0x5f   :  { %633 = vmatprep.subr.bf16.mxu0 %v812_v0 }
  0x62   :  { %634 = vmatpush3.bf16.msra.mxu0 %v685_v37 }
  0x63   :  { %635 = vmatprep.subr.bf16.mxu0 %v812_v0 }
  0x66   :  { %636 = vmatpush3.bf16.msra.mxu0 %v686_v38 }
  0x67   :  { %637 = vmatprep.subr.bf16.mxu0 %v812_v0 }
  0x6a   :  { %638 = vmatpush3.bf16.msra.mxu0 %v687_v39 }
  0x6b   :  { %639 = vmatprep.subr.bf16.mxu0 %v812_v0 }
  0x6e   :  { %640 = vmatpush3.bf16.msra.mxu0 %v688_v40 }
  0x6f   :  { %641 = vmatprep.subr.bf16.mxu0 %v812_v0 }
  0x72   :  { %642 = vmatpush3.bf16.msra.mxu0 %v689_v41 }
 0x114   :  { %v583_v28 = vpop.f32.mrf.mxu0 }
 0x116   :  { %v584_v29 = vpop.f32.mrf.mxu0 }
 0x117   :  { %v585_v30 = vadd.f32 %v584_v29, %v583_v28 }
 0x118   :  { %v586_v31 = vpop.f32.mrf.mxu0 }
 0x119   :  { %v291_v32 = vpack.c.bf16 %v585_v30, %v585_v30 }
 0x11a   :  { %v587_v33 = vpop.f32.mrf.mxu0 }
 0x11b   :  { %624 = vmatmul.mubr.bf16.vlgmr.msra.gmra.mxu1 %v291_v32 }
 0x1db   :  { %v374_v42 = vpop.f32.mrf.mxu1 }
 0x1dc   :  { %v556_v43 = vmul.f32 -1.702, %v374_v42 }
 0x1dd   :  { %v625_v44 = vpop.f32.mrf.mxu1 }
 0x1de   :  { %v382_v45 = vmul.f32 1.442695, %v556_v43 }
 0x1df   :  { %v377_v46 = vpop.f32.mrf.mxu1 }
 0x1e0   :  { %690 = vpow2.f32 %v382_v45 }
 0x1e1   :  { %v626_v47 = vpop.f32.mrf.mxu1 }
 0x1ed   :  { %v691_v48 = vpop.eup %690 }
 0x1ee   :  { %v384_v49 = vadd.f32 1.0, %v691_v48 }
 0x1f0   :  { %692 = vrcp.f32 %v384_v49 }
 0x1fd   :  { %v693_v50 = vpop.eup %692 }
 0x1fe   :  { %v387_v51 = vmul.f32 %v693_v50, %v374_v42 }
 0x200   :  { %v388_v52 = vpack.c.bf16 %v387_v51, %v387_v51 }
 0x202   :  { %644 = vmatmul.mubr.bf16.vlgmr.msra.gmra.mxu0 %v388_v52 }
 0x2c2   :  { %v471_v53 = vpop.f32.mrf.mxu0 }
 0x2c3   :  { %v477_v54 = vadd.f32 %v471_v53, %v374_v42 }
 0x2c4   :  { %v645_v55 = vpop.f32.mrf.mxu0 }
 0x2c5   :  { %478 = vadd.xlane.f32.xlu0 %v477_v54 }
 0x2c6   :  { %v474_v56 = vpop.f32.mrf.mxu0 }
 0x2c8   :  { %v646_v57 = vpop.f32.mrf.mxu0 }
 0x34e   :  { %v479_v60 = vpop.xlane.xlu0 %478 }
 0x34f   :  { %v480_v61 = vmul.f32 0.03125, %v479_v60 }
 0x351   :  { %v481_v62 = vsub.f32 %v477_v54, %v480_v61 }
 0x353   :  { %v484_v63 = vsel %vm146_vm1, %v481_v62, 0.0 }
 0x354   :  { %v485_v0 = vmul.f32 %v484_v63, %v484_v63 }
 0x356   :  { %486 = vadd.xlane.f32.xlu0 %v485_v0 }
 0x3df   :  { %v487_v1 = vpop.xlane.xlu0 %486 }
 0x3e0   :  { %v488_v2 = vmul.f32 0.03125, %v487_v1 }
 0x3e2   :  { %v489_v3 = vadd.f32 1e-05, %v488_v2 }
 0x3e4   :  { %694 = vrsqrt.f32 %v489_v3 }
 0x3f1   :  { %v695_v4 = vpop.eup %694 }
 0x3f2   :  { %v491_v6 = vmul.f32 %v695_v4, %v484_v63 }
 0x3f4   :  { %v498_v8 = vmul.f32 %v565_v5, %v491_v6 }
 0x3f6   :  { %v505_v9 = vadd.f32 %v566_v7, %v498_v8 }
 0x3f8   :  { %v506_v10 = vmul.f32 %v505_v9, %v505_v9 }
 0x3fa   :  { %507 = vadd.xlane.f32.xlu1 %v506_v10 }
 0x483   :  { %v508_v11 = vpop.xlane.xlu1 %507 }
 0x484   :  { %v509_v12 = vadd.f32 1e-12, %v508_v11 }
 0x486   :  { %696 = vrsqrt.f32 %v509_v12 }
 0x493   :  { %v697_v13 = vpop.eup %696 }
 0x494   :  { %v511_v14 = vmul.f32 %v697_v13, %v505_v9 }
 0x496   :  { %512 = vst [vmem:[#allocation10] sm:$0xff] %v511_v14 }
 0x497   :  { %789 = shalt.err (!%p786_p10)
}
 0x498   :  { %522 = dma.vmem_to_hbm [thread:$0]  %s520_s20, 128, %s904_s6, [#allocation4]  }
 0x499   :  { %804 = dma.done.wait [#allocation4], 128  }
 0x49a   :  { %805 = vsyncadd [#allocation4], 4294967168 }
 0x49b   :  { %526 = vsyncpa [#allocation3], 1 }
 0x49c   :  { %527 = vsyncpa [#allocation6], 1 }
 0x49d   :  { %528 = vsyncpa [#allocation9], 1 }
 0x49e   :  { %529 = vsyncpa [#allocation4], 1 }

// kernel: tpu_custom_call.1
= control target key start
LH: loop header
LB: loop body
LE: loop exit
PB: predicated region body
PF: predicated region fallthrough
CT: control target
= control target key end

     0   :  { %11 = vsyncpa [#allocation3], 0  ;;  %s898_s0 = inlined_call_operand.hbm [shape: bf16[8,256], index: 0, kind: input, shape index: {}]   ;;  %s899_s1 = inlined_call_operand.hbm [shape: bf16[256,128], index: 1, kind: input, shape index: {}]   ;;  %s900_s2 = inlined_call_operand.hbm [shape: bf16[128,128], index: 2, kind: input, shape index: {}]   ;;  %s901_s3 = inlined_call_operand.hbm [shape: bf16[128,128], index: 3, kind: input, shape index: {}]   ;;  %s902_s4 = inlined_call_operand.vmem [shape: f32[1,128], index: 4, kind: input, shape index: {}]   ;;  %s903_s5 = inlined_call_operand.vmem [shape: f32[1,128], index: 5, kind: input, shape index: {}]   ;;  %s904_s6 = inlined_call_operand.hbm [shape: f32[8,128], index: 6, kind: output, shape index: {}]  }
   0x1   :  { %12 = vsyncpa [#allocation6], 0 }
   0x2   :  { %13 = vsyncpa [#allocation9], 0 }
   0x3   :  { %14 = vsyncpa [#allocation4], 0  ;;  %s806_s21 = smov [#allocation5]  }
   0x4   :  { %s30_s22 = sshll.u32 %s806_s21, 4  ;;  %s31_s22 = int_to_ptr.vmem [resolvable:$true] %s30_s22 }
   0x5   :  { %s706_s23 = scalar_lea.vmem %s31_s22, 2048  ;;  %p711_p1 = scmp.lt.s32.totalorder %s31_s22, %s31_s22 }
   0x6   :  { %p707_p0 = scmp.ne.s32.totalorder %s31_s22, %s706_s23  ;;  %p712_p2 = scmp.lt.s32.totalorder %s706_s23, %s706_s23 }
   0x8   :  { %p713_p3 = por %p712_p2, %p711_p1 }
   0xa   :  { %p714_p4 = pnand %p713_p3, %p707_p0 }
   0xc   :  { %717 = shalt.err (!%p714_p4)
}
   0xd   :  { %s807_s24 = smov 64   ;;  %s808_s25 = smov 4  }
   0xe   :  { %36 = dma.hbm_to_vmem [thread:$0]  %s899_s1, 2048, %s31_s22, [#allocation6], %s807_s24, %s807_s24, %s808_s25  }
   0xf   :  { %s809_s28 = smov [#allocation2]   ;;  %s810_s30 = smov [#allocation7]  }
  0x10   :  { %s21_s29 = sshll.u32 %s809_s28, 4  ;;  %s42_s7 = sshll.u32 %s810_s30, 4  ;;  %s22_s29 = int_to_ptr.vmem [resolvable:$true] %s21_s29  ;;  %s43_s7 = int_to_ptr.vmem [resolvable:$true] %s42_s7 }
  0x11   :  { %s726_s8 = scalar_lea.vmem %s22_s29, 128  ;;  %p731_p6 = scmp.lt.s32.totalorder %s22_s29, %s22_s29 }
  0x12   :  { %p727_p5 = scmp.ne.s32.totalorder %s22_s29, %s726_s8  ;;  %p732_p7 = scmp.lt.s32.totalorder %s726_s8, %s726_s8 }
  0x14   :  { %p733_p8 = por %p732_p7, %p731_p6 }
  0x16   :  { %p734_p9 = pnand %p733_p8, %p727_p5 }
  0x18   :  { %737 = shalt.err (!%p734_p9)
}
  0x19   :  { %24 = dma.hbm_to_vmem [thread:$0]  %s898_s0, 128, %s22_s29, [#allocation3]  }
  0x1a   :  { %s746_s11 = scalar_lea.vmem %s43_s7, 1024  ;;  %p751_p11 = scmp.lt.s32.totalorder %s43_s7, %s43_s7 }
  0x1b   :  { %p747_p10 = scmp.ne.s32.totalorder %s43_s7, %s746_s11  ;;  %p752_p12 = scmp.lt.s32.totalorder %s746_s11, %s746_s11 }
  0x1d   :  { %p753_p13 = por %p752_p12, %p751_p11 }
  0x1f   :  { %p754_p0 = pnand %p753_p13, %p747_p10 }
  0x21   :  { %757 = shalt.err (!%p754_p0)
}
  0x22   :  { %48 = dma.hbm_to_vmem [thread:$0]  %s900_s2, 1024, %s43_s7, [#allocation6], %s807_s24, %s807_s24, %s808_s25  }
  0x23   :  { %s811_s13 = smov [#allocation8]  }
  0x24   :  { %s54_s14 = sshll.u32 %s811_s13, 4  ;;  %s55_s14 = int_to_ptr.vmem [resolvable:$true] %s54_s14 }
  0x25   :  { %s766_s15 = scalar_lea.vmem %s55_s14, 1024  ;;  %p771_p2 = scmp.lt.s32.totalorder %s55_s14, %s55_s14 }
  0x26   :  { %p767_p1 = scmp.ne.s32.totalorder %s55_s14, %s766_s15  ;;  %p772_p3 = scmp.lt.s32.totalorder %s766_s15, %s766_s15 }
  0x28   :  { %p773_p4 = por %p772_p3, %p771_p2 }
  0x2a   :  { %p774_p5 = pnand %p773_p4, %p767_p1 }
  0x2c   :  { %777 = shalt.err (!%p774_p5)
}
  0x2d   :  { %60 = dma.hbm_to_vmem [thread:$0]  %s901_s3, 1024, %s55_s14, [#allocation9], %s807_s24, %s807_s24, %s808_s25  }
  0x2e   :  { %798 = dma.done.wait [#allocation3], 128  }
  0x2f   :  { %799 = vsyncadd [#allocation3], 4294967168 }
  0x30   :  { %800 = dma.done.wait [#allocation6], 3072  }
  0x31   :  { %801 = vsyncadd [#allocation6], 4294964224 }
  0x32   :  { %802 = dma.done.wait [#allocation9], 1024  }
  0x33   :  { %803 = vsyncadd [#allocation9], 4294966272  ;;  %v812_v0 = vmov 0.0   ;;  %v656_v1 = vld [vmem:[#allocation5 + $0x78] sm:$0xff]   ;;  %v658_v3 = vld [vmem:[#allocation5 + $0x70] sm:$0xff]   ;;  %vm813_vm0 = vmmov 0   ;;  %v144_v58 = vlaneseq }
  0x34   :  { %607 = vmatprep.subr.bf16.mxu1 %v812_v0  ;;  %v657_v2 = vld [vmem:[#allocation5 + $0x38] sm:$0xff]   ;;  %567 = vmatprep.subr.bf16.mxu0 %v656_v1  ;;  %v659_v4 = vld [vmem:[#allocation5 + $0x30] sm:$0xff]   ;;  %v660_v5 = vld [vmem:[#allocation5 + $0x68] sm:$0xff]   ;;  %s814_s19 = smov [#allocation10]  }
  0x35   :  { %568 = vmatpush3.bf16.msra.mxu0 %v657_v2  ;;  %v661_v6 = vld [vmem:[#allocation5 + $0x28] sm:$0xff]   ;;  %v662_v7 = vld [vmem:[#allocation5 + $0x60] sm:$0xff]   ;;  %v664_v9 = vld [vmem:[#allocation5 + $0x58] sm:$0xff]   ;;  %623 = vmatprep.mubr.msk.bf16.mxu1 %vm813_vm0, %v812_v0  ;;  %v145_v59 = vand.u32 127, %v144_v58  ;;  %s519_s20 = sshll.u32 %s814_s19, 4  ;;  %s520_s20 = int_to_ptr.vmem [resolvable:$true] %s519_s20 }
  0x36   :  { %569 = vmatprep.subr.bf16.mxu0 %v658_v3  ;;  %v663_v8 = vld [vmem:[#allocation5 + $0x20] sm:$0xff]   ;;  %v665_v10 = vld [vmem:[#allocation5 + $0x18] sm:$0xff]   ;;  %v666_v11 = vld [vmem:[#allocation5 + $0x50] sm:$0xff]   ;;  %s778_s21 = scalar_lea.vmem %s520_s20, 128  ;;  %p783_p7 = scmp.lt.s32.totalorder %s520_s20, %s520_s20 }
  0x37   :  { %v147_v12 = vld [vmem:[#allocation2] sm:$0xff]  ;;  %v667_v15 = vld [vmem:[#allocation5 + $0x10] sm:$0xff]   ;;  %v668_v16 = vld [vmem:[#allocation5 + $0x48] sm:$0xff]   ;;  %vm146_vm1 = vcmp.lt.s32.totalorder %v145_v59, 32  ;;  %p779_p6 = scmp.ne.s32.totalorder %s520_s20, %s778_s21  ;;  %p784_p8 = scmp.lt.s32.totalorder %s778_s21, %s778_s21 }
  0x38   :  { %v531_v13 = vcombine.high %v147_v12, %v147_v12  ;;  %v674_v14 = vld [vmem:[#allocation7 + $0x38] sm:$0xff]   ;;  %v675_v17 = vld [vmem:[#allocation7 + $0x30] sm:$0xff]   ;;  %v669_v18 = vld [vmem:[#allocation5 + $0x8] sm:$0xff]   ;;  %v530_v23 = vcombine.low %v147_v12, %v147_v12 }
  0x39   :  { %570 = vmatpush3.bf16.msra.mxu0 %v659_v4  ;;  %608 = vmatpush3.bf16.msra.mxu1 %v674_v14  ;;  %v670_v19 = vld [vmem:[#allocation5 + $0x40] sm:$0xff]   ;;  %v676_v20 = vld [vmem:[#allocation7 + $0x28] sm:$0xff]   ;;  %v678_v24 = vld [vmem:[#allocation7 + $0x18] sm:$0xff]   ;;  %p785_p9 = por %p784_p8, %p783_p7 }
  0x3a   :  { %571 = vmatprep.subr.bf16.mxu0 %v660_v5  ;;  %283 = vmatprep.mubr.bf16.mxu0 %v531_v13  ;;  %v671_v21 = vld [vmem:[#allocation5] sm:$0xff]   ;;  %v679_v25 = vld [vmem:[#allocation7 + $0x10] sm:$0xff]   ;;  %v680_v26 = vld [vmem:[#allocation7 + $0x8] sm:$0xff]  }
  0x3b   :  { %609 = vmatprep.subr.bf16.mxu1 %v812_v0  ;;  %v677_v22 = vld [vmem:[#allocation7 + $0x20] sm:$0xff]   ;;  %v682_v34 = vld [vmem:[#allocation8 + $0x38] sm:$0xff]   ;;  %v683_v35 = vld [vmem:[#allocation8 + $0x30] sm:$0xff]   ;;  %p786_p10 = pnand %p785_p9, %p779_p6 }
  0x3c   :  { %v681_v27 = vld [vmem:[#allocation7] sm:$0xff]   ;;  %v684_v36 = vld [vmem:[#allocation8 + $0x28] sm:$0xff]   ;;  %v686_v38 = vld [vmem:[#allocation8 + $0x18] sm:$0xff]  }
  0x3d   :  { %572 = vmatpush3.bf16.msra.mxu0 %v661_v6  ;;  %610 = vmatpush3.bf16.msra.mxu1 %v675_v17  ;;  %v685_v37 = vld [vmem:[#allocation8 + $0x20] sm:$0xff]   ;;  %v687_v39 = vld [vmem:[#allocation8 + $0x10] sm:$0xff]   ;;  %v688_v40 = vld [vmem:[#allocation8 + $0x8] sm:$0xff]  }
  0x3e   :  { %573 = vmatprep.subr.bf16.mxu0 %v662_v7  ;;  %611 = vmatprep.subr.bf16.mxu1 %v812_v0  ;;  %v689_v41 = vld [vmem:[#allocation8] sm:$0xff]   ;;  %v565_v5 = vld [vmem:[%s902_s4] ss:$0 sm:$0xff] }
  0x3f   :  { %v566_v7 = vld [vmem:[%s903_s5] ss:$0 sm:$0xff] }
  0x41   :  { %574 = vmatpush3.bf16.msra.mxu0 %v663_v8  ;;  %612 = vmatpush3.bf16.msra.mxu1 %v676_v20 }
  0x42   :  { %575 = vmatprep.subr.bf16.mxu0 %v664_v9  ;;  %613 = vmatprep.subr.bf16.mxu1 %v812_v0 }
  0x45   :  { %576 = vmatpush3.bf16.msra.mxu0 %v665_v10  ;;  %614 = vmatpush3.bf16.msra.mxu1 %v677_v22 }
  0x46   :  { %577 = vmatprep.subr.bf16.mxu0 %v666_v11  ;;  %615 = vmatprep.subr.bf16.mxu1 %v812_v0 }
  0x49   :  { %578 = vmatpush3.bf16.msra.mxu0 %v667_v15  ;;  %616 = vmatpush3.bf16.msra.mxu1 %v678_v24 }
  0x4a   :  { %579 = vmatprep.subr.bf16.mxu0 %v668_v16  ;;  %617 = vmatprep.subr.bf16.mxu1 %v812_v0 }
  0x4d   :  { %580 = vmatpush3.bf16.msra.mxu0 %v669_v18  ;;  %618 = vmatpush3.bf16.msra.mxu1 %v679_v25 }
  0x4e   :  { %581 = vmatprep.subr.bf16.mxu0 %v670_v19  ;;  %619 = vmatprep.subr.bf16.mxu1 %v812_v0 }
  0x51   :  { %582 = vmatpush3.bf16.msra.mxu0 %v671_v21  ;;  %620 = vmatpush3.bf16.msra.mxu1 %v680_v26 }
  0x52   :  { %627 = vmatprep.subr.bf16.mxu0 %v812_v0  ;;  %621 = vmatprep.subr.bf16.mxu1 %v812_v0 }
  0x54   :  { %284 = vmatmul.mubr.bf16.vlgmr.msra.gmra.mxu0 %v530_v23 }
  0x55   :  { %622 = vmatpush3.bf16.msra.mxu1 %v681_v27  ;;  %643 = vmatprep.mubr.msk.bf16.mxu0 %vm813_vm0, %v812_v0 }
  0x56   :  { %628 = vmatpush3.bf16.msra.mxu0 %v682_v34 }
  0x57   :  { %629 = vmatprep.subr.bf16.mxu0 %v812_v0 }
  0x5a   :  { %630 = vmatpush3.bf16.msra.mxu0 %v683_v35 }
  0x5b   :  { %631 = vmatprep.subr.bf16.mxu0 %v812_v0 }
  0x5e   :  { %632 = vmatpush3.bf16.msra.mxu0 %v684_v36 }
  0x5f   :  { %633 = vmatprep.subr.bf16.mxu0 %v812_v0 }
  0x62   :  { %634 = vmatpush3.bf16.msra.mxu0 %v685_v37 }
  0x63   :  { %635 = vmatprep.subr.bf16.mxu0 %v812_v0 }
  0x66   :  { %636 = vmatpush3.bf16.msra.mxu0 %v686_v38 }
  0x67   :  { %637 = vmatprep.subr.bf16.mxu0 %v812_v0 }
  0x6a   :  { %638 = vmatpush3.bf16.msra.mxu0 %v687_v39 }
  0x6b   :  { %639 = vmatprep.subr.bf16.mxu0 %v812_v0 }
  0x6e   :  { %640 = vmatpush3.bf16.msra.mxu0 %v688_v40 }
  0x6f   :  { %641 = vmatprep.subr.bf16.mxu0 %v812_v0 }
  0x72   :  { %642 = vmatpush3.bf16.msra.mxu0 %v689_v41 }
 0x114   :  { %v583_v28 = vpop.f32.mrf.mxu0 }
 0x116   :  { %v584_v29 = vpop.f32.mrf.mxu0 }
 0x117   :  { %v585_v30 = vadd.f32 %v584_v29, %v583_v28 }
 0x118   :  { %v586_v31 = vpop.f32.mrf.mxu0 }
 0x119   :  { %v291_v32 = vpack.c.bf16 %v585_v30, %v585_v30 }
 0x11a   :  { %v587_v33 = vpop.f32.mrf.mxu0 }
 0x11b   :  { %624 = vmatmul.mubr.bf16.vlgmr.msra.gmra.mxu1 %v291_v32 }
 0x1db   :  { %v374_v42 = vpop.f32.mrf.mxu1 }
 0x1dc   :  { %v556_v43 = vmul.f32 -1.702, %v374_v42 }
 0x1dd   :  { %v625_v44 = vpop.f32.mrf.mxu1 }
 0x1de   :  { %v382_v45 = vmul.f32 1.442695, %v556_v43 }
 0x1df   :  { %v377_v46 = vpop.f32.mrf.mxu1 }
 0x1e0   :  { %690 = vpow2.f32 %v382_v45 }
 0x1e1   :  { %v626_v47 = vpop.f32.mrf.mxu1 }
 0x1ed   :  { %v691_v48 = vpop.eup %690 }
 0x1ee   :  { %v384_v49 = vadd.f32 1.0, %v691_v48 }
 0x1f0   :  { %692 = vrcp.f32 %v384_v49 }
 0x1fd   :  { %v693_v50 = vpop.eup %692 }
 0x1fe   :  { %v387_v51 = vmul.f32 %v693_v50, %v374_v42 }
 0x200   :  { %v388_v52 = vpack.c.bf16 %v387_v51, %v387_v51 }
 0x202   :  { %644 = vmatmul.mubr.bf16.vlgmr.msra.gmra.mxu0 %v388_v52 }
 0x2c2   :  { %v471_v53 = vpop.f32.mrf.mxu0 }
 0x2c3   :  { %v477_v54 = vadd.f32 %v471_v53, %v374_v42 }
 0x2c4   :  { %v645_v55 = vpop.f32.mrf.mxu0 }
 0x2c5   :  { %478 = vadd.xlane.f32.xlu0 %v477_v54 }
 0x2c6   :  { %v474_v56 = vpop.f32.mrf.mxu0 }
 0x2c8   :  { %v646_v57 = vpop.f32.mrf.mxu0 }
 0x34e   :  { %v479_v60 = vpop.xlane.xlu0 %478 }
 0x34f   :  { %v480_v61 = vmul.f32 0.03125, %v479_v60 }
 0x351   :  { %v481_v62 = vsub.f32 %v477_v54, %v480_v61 }
 0x353   :  { %v484_v63 = vsel %vm146_vm1, %v481_v62, 0.0 }
 0x354   :  { %v485_v0 = vmul.f32 %v484_v63, %v484_v63 }
 0x356   :  { %486 = vadd.xlane.f32.xlu0 %v485_v0 }
 0x3df   :  { %v487_v1 = vpop.xlane.xlu0 %486 }
 0x3e0   :  { %v488_v2 = vmul.f32 0.03125, %v487_v1 }
 0x3e2   :  { %v489_v3 = vadd.f32 1e-05, %v488_v2 }
 0x3e4   :  { %694 = vrsqrt.f32 %v489_v3 }
 0x3f1   :  { %v695_v4 = vpop.eup %694 }
 0x3f2   :  { %v491_v6 = vmul.f32 %v695_v4, %v484_v63 }
 0x3f4   :  { %v498_v8 = vmul.f32 %v565_v5, %v491_v6 }
 0x3f6   :  { %v505_v9 = vadd.f32 %v566_v7, %v498_v8 }
 0x3f8   :  { %v506_v10 = vmul.f32 %v505_v9, %v505_v9 }
 0x3fa   :  { %507 = vadd.xlane.f32.xlu1 %v506_v10 }
 0x483   :  { %v508_v11 = vpop.xlane.xlu1 %507 }
 0x484   :  { %v509_v12 = vadd.f32 1e-12, %v508_v11 }
 0x486   :  { %696 = vrsqrt.f32 %v509_v12 }
 0x493   :  { %v697_v13 = vpop.eup %696 }
 0x494   :  { %v511_v14 = vmul.f32 %v697_v13, %v505_v9 }
 0x496   :  { %512 = vst [vmem:[#allocation10] sm:$0xff] %v511_v14 }
 0x497   :  { %789 = shalt.err (!%p786_p10)
}
 0x498   :  { %522 = dma.vmem_to_hbm [thread:$0]  %s520_s20, 128, %s904_s6, [#allocation4]  }
 0x499   :  { %804 = dma.done.wait [#allocation4], 128  }
 0x49a   :  { %805 = vsyncadd [#allocation4], 4294967168 }
 0x49b   :  { %526 = vsyncpa [#allocation3], 1 }
 0x49c   :  { %527 = vsyncpa [#allocation6], 1 }
 0x49d   :  { %528 = vsyncpa [#allocation9], 1 }
 0x49e   :  { %529 = vsyncpa [#allocation4], 1 }

</bundles_post_ra>
